<compile_context>
chip_gen: v7x
topology: tpu7x:2x2x1
jax: 0.10.0
libtpu: 0.0.40
codegen_flags: <defaults>
</compile_context>

<pallas_src>
import jax
import jax.numpy as jnp
from jax.experimental import pallas as pl
from jax.experimental.pallas import tpu as pltpu


def _round_up(x, m):
    return (x + m - 1) // m * m


# ----------------------------------------------------------------------------
# Pallas kernel: fused matmul + bias (one (tm, tn) output tile per grid step)
# ----------------------------------------------------------------------------
def _linear_kernel(x_ref, w_ref, b_ref, o_ref):
    # Cast activations to the weight dtype (bf16) in VMEM so the MXU runs a
    # single-pass bf16 matmul with f32 accumulation; bias add stays f32 (VPU).
    x = x_ref[...].astype(w_ref.dtype)
    acc = jnp.dot(x, w_ref[...], preferred_element_type=jnp.float32)
    o_ref[...] = (acc + b_ref[...]).astype(o_ref.dtype)


def _block_spec(block_shape, index_map, *, single_buffer=False):
    """BlockSpec, optionally single-buffered (for grid-resident operands)."""
    if single_buffer:
        try:
            return pl.BlockSpec(block_shape, index_map,
                                pipeline_mode=pl.Buffered(1))
        except Exception:  # fall back cleanly if pipeline_mode is unavailable
            pass
    return pl.BlockSpec(block_shape, index_map)


# ----------------------------------------------------------------------------
# One-time parameter layout (hoisted out of the per-call path)
# ----------------------------------------------------------------------------
def prepare_linear_params(weight, bias, *, weight_dtype=jnp.bfloat16):
    """(N, K) torch-layout weight + (N,) bias  ->  kernel layout.

    Returns
      w_kn: (K, n_pad) `weight_dtype`, transposed and zero-padded so output
            stores are lane-dense (n_pad = round_up(N, 128)).
      b_1n: (1, n_pad) float32 bias row.
    Done ONCE at init; the forward pass never rebuilds the weight layout.
    """
    N, K = weight.shape
    n_pad = _round_up(N, 128)
    w_kn = jnp.zeros((K, n_pad), weight_dtype).at[:, :N].set(
        weight.T.astype(weight_dtype))
    b_1n = jnp.zeros((1, n_pad), jnp.float32).at[:, :N].set(
        bias.astype(jnp.float32))
    return w_kn, b_1n


# ----------------------------------------------------------------------------
# Forward wrapper
# ----------------------------------------------------------------------------
def linear_pallas(x, w_kn, b_1n, out_features, *, tile_m=256, tile_n=512,
                  out_dtype=None):
    """nn.Linear forward: x (..., K) -> (..., out_features).

    `w_kn` / `b_1n` must come from prepare_linear_params (pre-transposed,
    lane-padded, bf16 weight), so no per-call weight-layout work is needed.
    """
    orig_shape = x.shape
    K = orig_shape[-1]
    k_w, n_pad = w_kn.shape
    assert k_w == K, (k_w, K)
    N = out_features
    out_dtype = x.dtype if out_dtype is None else out_dtype

    x2d = x.reshape(-1, K)
    M = x2d.shape[0]

    # ---- row (M) tiling: no activation padding at all.
    #   * tiny M: one full-extent (M, K) block.
    #   * medium M: two sublane-aligned blocks so both v7x TensorCores get work.
    #   * large M: tile_m-row blocks with a cdiv grid (masked tail, no pad).
    if M <= 8:
        tm = M
    elif M <= 2 * tile_m:
        tm = _round_up(pl.cdiv(M, 2), 8)
    else:
        tm = tile_m
    grid_m = pl.cdiv(M, tm)

    # ---- column (N) tiling: keep the whole (K, n_pad) weight resident when it
    # comfortably fits VMEM, otherwise stream tn-wide weight slabs.
    weight_bytes = K * n_pad * w_kn.dtype.itemsize
    if weight_bytes <= 8 * 1024 * 1024:
        tn = n_pad
    else:
        tn = next(t for t in (tile_n, 256, 128) if n_pad % t == 0)
    grid_n = n_pad // tn
    resident = grid_n == 1
    # Only request single-buffering when the second pipeline buffer of the
    # resident weight would actually cost meaningful VMEM.
    single_buffer = resident and weight_bytes >= (1 << 20)

    out = pl.pallas_call(
        _linear_kernel,
        out_shape=jax.ShapeDtypeStruct((M, n_pad), out_dtype),
        grid_spec=pltpu.PrefetchScalarGridSpec(
            num_scalar_prefetch=0,
            grid=(grid_m, grid_n),
            in_specs=[
                pl.BlockSpec((tm, K), lambda i, j: (i, 0)),      # activations
                _block_spec((K, tn), lambda i, j: (0, j),        # weight
                            single_buffer=single_buffer),
                _block_spec((1, tn), lambda i, j: (0, j),        # bias
                            single_buffer=single_buffer),
            ],
            out_specs=pl.BlockSpec((tm, tn), lambda i, j: (i, j)),
        ),
        compiler_params=pltpu.CompilerParams(
            dimension_semantics=("parallel", "parallel"),
            vmem_limit_bytes=32 * 1024 * 1024,
        ),
    )(x2d, w_kn, b_1n)
    # NOTE: for extremely large K one would add a third "arbitrary" grid axis
    # with an f32 VMEM accumulator; K is kept whole here because tiling it
    # would require per-call K padding of x or an in-kernel tail mask.

    if n_pad != N:
        out = out[:, :N]
    return out.reshape(*orig_shape[:-1], N)


# ----------------------------------------------------------------------------
# Parameter init matching the PyTorch module
# ----------------------------------------------------------------------------
def init_lenet_linear(key, in_features, out_features):
    kw, kb = jax.random.split(key)
    bound_w = 2.4 / in_features                   # nn.init.uniform_ in the module
    bound_b = 1.0 / (in_features ** 0.5)          # PyTorch default bias init
    weight = jax.random.uniform(kw, (out_features, in_features), jnp.float32,
                                -bound_w, bound_w)
    bias = jax.random.uniform(kb, (out_features,), jnp.float32,
                              -bound_b, bound_b)
    return weight, bias


if __name__ == "__main__":
    key = jax.random.PRNGKey(0)
    k_p, k_x = jax.random.split(key)

    # Small shapes consistent with LeNet's fully-connected layer.
    batch, in_features, out_features = 2, 400, 120
    weight, bias = init_lenet_linear(k_p, in_features, out_features)
    x = jax.random.normal(k_x, (batch, in_features), jnp.float32)

    # One-time kernel layout of the parameters (hoisted out of the forward).
    w_kn, b_1n = jax.block_until_ready(prepare_linear_params(weight, bias))

    fwd = jax.jit(linear_pallas, static_argnames=("out_features",))
    out = fwd(x, w_kn, b_1n, out_features=out_features)
    out = jax.block_until_ready(out)

    # Correctness vs. the plain-JAX f32 reference of nn.Linear. Tolerance is
    # slightly loosened because the MXU is fed bf16 (f32 accumulation).
    ref = x @ weight.T + bias
    assert out.shape == (batch, out_features), out.shape
    assert jnp.allclose(out, ref, atol=1e-2, rtol=1e-2), float(
        jnp.max(jnp.abs(out - ref)))
    print("KERNEL_OK")
</pallas_src>

<mosaic_0001>
module attributes {stable_mosaic.version = 11 : i64} {
  func.func @_linear_kernel(%arg0: i32, %arg1: i32, %arg2: memref<2x400xf32, #tpu.memory_space<vmem>>, %arg3: memref<400x128xbf16, #tpu.memory_space<vmem>>, %arg4: memref<1x128xf32, #tpu.memory_space<vmem>>, %arg5: memref<2x128xf32, #tpu.memory_space<vmem>>) attributes {dimension_semantics = [#tpu.dimension_semantics<parallel>, #tpu.dimension_semantics<parallel>], iteration_bounds = array<i64: 1, 1>, scalar_prefetch = 0 : i64, scratch_operands = 0 : i64, tpu.core_type = #tpu.core_type<tc>, window_params = [{transform_indices = @transform_0, window_bounds = array<i64: 2, 400>}, {transform_indices = @transform_1, window_bounds = array<i64: 400, 128>}, {transform_indices = @transform_2, window_bounds = array<i64: 1, 128>}, {transform_indices = @transform_3, window_bounds = array<i64: 2, 128>}]} {
    %c0 = arith.constant 0 : index
    %c0_0 = arith.constant 0 : index
    %0 = vector.load %arg2[%c0, %c0_0] : memref<2x400xf32, #tpu.memory_space<vmem>>, vector<2x400xf32>
    %1 = arith.truncf %0 : vector<2x400xf32> to vector<2x400xbf16>
    %c0_1 = arith.constant 0 : index
    %c0_2 = arith.constant 0 : index
    %2 = vector.load %arg3[%c0_1, %c0_2] : memref<400x128xbf16, #tpu.memory_space<vmem>>, vector<400x128xbf16>
    %cst = arith.constant dense<0.000000e+00> : vector<2x128xf32>
    %3 = tpu.matmul %1, %2, %cst {dimension_numbers = #tpu.dot_dimension_numbers<[1], [0], [0], [1], [0, 0, 1, 1], [], []>} : vector<2x400xbf16>, vector<400x128xbf16>, vector<2x128xf32> -> vector<2x128xf32>
    %c0_3 = arith.constant 0 : index
    %c0_4 = arith.constant 0 : index
    %4 = vector.load %arg4[%c0_3, %c0_4] : memref<1x128xf32, #tpu.memory_space<vmem>>, vector<1x128xf32>
    %5 = vector.broadcast %4 : vector<1x128xf32> to vector<2x128xf32>
    %6 = arith.addf %3, %5 : vector<2x128xf32>
    %c0_5 = arith.constant 0 : index
    %c0_6 = arith.constant 0 : index
    %7 = vector.load %arg5[%c0_5, %c0_6] : memref<2x128xf32, #tpu.memory_space<vmem>>, vector<2x128xf32>
    tpu.vector_store %arg5[%c0_5, %c0_6], %6 {strides = array<i32>} : memref<2x128xf32, #tpu.memory_space<vmem>>, vector<2x128xf32>,
    return
  }
  func.func @transform_0(%arg0: i32, %arg1: i32) -> (i32, i32) {
    %c0_i32 = arith.constant 0 : i32
    %c0_i32_0 = arith.constant 0 : i32
    return %arg0, %c0_i32 : i32, i32
  }
  func.func @transform_1(%arg0: i32, %arg1: i32) -> (i32, i32) {
    %c0_i32 = arith.constant 0 : i32
    %c0_i32_0 = arith.constant 0 : i32
    return %c0_i32, %arg1 : i32, i32
  }
  func.func @transform_2(%arg0: i32, %arg1: i32) -> (i32, i32) {
    %c0_i32 = arith.constant 0 : i32
    %c0_i32_0 = arith.constant 0 : i32
    return %c0_i32, %arg1 : i32, i32
  }
  func.func @transform_3(%arg0: i32, %arg1: i32) -> (i32, i32) {
    %c0_i32 = arith.constant 0 : i32
    return %arg0, %arg1 : i32, i32
  }
}

</mosaic_0001>

<bundles_post_ra>
// kernel: linear_pallas.1
= control target key start
LH: loop header
LB: loop body
LE: loop exit
PB: predicated region body
PF: predicated region fallthrough
CT: control target
= control target key end

     0   :  { %8 = vsyncpa [#allocation3], 0  ;;  %s613_s0 = inlined_call_operand.hbm [shape: f32[2,400], index: 0, kind: input, shape index: {}]   ;;  %s614_s1 = inlined_call_operand.hbm [shape: bf16[400,128], index: 1, kind: input, shape index: {}]   ;;  %s615_s2 = inlined_call_operand.vmem [shape: f32[1,128], index: 2, kind: input, shape index: {}]   ;;  %s616_s3 = inlined_call_operand.hbm [shape: f32[2,128], index: 3, kind: output, shape index: {}]  }
   0x1   :  { %9 = vsyncpa [#allocation6], 0 }
   0x2   :  { %10 = vsyncpa [#allocation4], 0  ;;  %s531_s12 = smov [#allocation2]   ;;  %s532_s14 = smov [#allocation5]  }
   0x3   :  { %s17_s13 = sshll.u32 %s531_s12, 4  ;;  %s26_s15 = sshll.u32 %s532_s14, 4  ;;  %s18_s13 = int_to_ptr.vmem [resolvable:$true] %s17_s13  ;;  %s558_s15 = int_to_ptr.vmem [resolvable:$true] %s26_s15 }
   0x4   :  { %s459_s18 = scalar_lea.hbm %s613_s0, 128 }
   0x5   :  { %p460_p0 = scmp.ne.s32.totalorder %s613_s0, %s459_s18  ;;  %p463_p1 = scmp.lt.u32.totalorder %s459_s18, %s613_s0 }
   0x7   :  { %p465_p2 = pnand %p463_p1, %p460_p0 }
   0x9   :  { %468 = shalt.err (!%p465_p2)
}
   0xa   :  { %s469_s23 = scalar_lea.vmem %s18_s13, 128  ;;  %p474_p4 = scmp.lt.s32.totalorder %s18_s13, %s18_s13 }
   0xb   :  { %p470_p3 = scmp.ne.s32.totalorder %s18_s13, %s469_s23  ;;  %p475_p5 = scmp.lt.s32.totalorder %s469_s23, %s469_s23 }
   0xd   :  { %p476_p6 = por %p475_p5, %p474_p4 }
   0xf   :  { %p477_p7 = pnand %p476_p6, %p470_p3 }
  0x11   :  { %480 = shalt.err (!%p477_p7)
}
  0x12   :  { %20 = dma.hbm_to_vmem [thread:$0]  %s613_s0, 128, %s18_s13, [#allocation3]  }
  0x13   :  { %s481_s28 = scalar_lea.hbm %s614_s1, 3200 }
  0x14   :  { %p482_p8 = scmp.ne.s32.totalorder %s614_s1, %s481_s28  ;;  %p485_p9 = scmp.lt.u32.totalorder %s481_s28, %s614_s1 }
  0x16   :  { %p487_p10 = pnand %p485_p9, %p482_p8 }
  0x18   :  { %490 = shalt.err (!%p487_p10)
}
  0x19   :  { %s491_s6 = scalar_lea.vmem %s558_s15, 3200  ;;  %p496_p12 = scmp.lt.s32.totalorder %s558_s15, %s558_s15 }
  0x1a   :  { %p492_p11 = scmp.ne.s32.totalorder %s558_s15, %s491_s6  ;;  %p497_p13 = scmp.lt.s32.totalorder %s491_s6, %s491_s6 }
  0x1c   :  { %p498_p0 = por %p497_p13, %p496_p12 }
  0x1e   :  { %p499_p1 = pnand %p498_p0, %p492_p11 }
  0x20   :  { %502 = shalt.err (!%p499_p1)
}
  0x21   :  { %s533_s0 = smov 64   ;;  %s534_s7 = smov 4  }
  0x22   :  { %32 = dma.hbm_to_vmem [thread:$0]  %s614_s1, 3200, %s558_s15, [#allocation6], %s533_s0, %s533_s0, %s534_s7  }
  0x23   :  { %525 = dma.done.wait [#allocation3], 128  }
  0x24   :  { %526 = vsyncadd [#allocation3], 4294967168 }
  0x25   :  { %527 = dma.done.wait [#allocation6], 3200  }
  0x26   :  { %528 = vsyncadd [#allocation6], 4294964096  ;;  %v535_v0 = vmov 0   ;;  %v433_v1 = vld [vmem:[#allocation5 + $0x40] sm:$0xff]   ;;  %v436_v4 = vld [vmem:[#allocation5 + $0x48] sm:$0xff]   ;;  %v48_v16 = vlaneseq  ;;  %vm276_vm0 = vcmask 130048  }
  0x27   :  { %320 = vmatprep.subr.bf16.mxu1 %v535_v0  ;;  %v434_v2 = vld [vmem:[#allocation5 + $0x80] sm:$0xff]   ;;  %404 = vmatprep.subr.bf16.mxu0 %v433_v1  ;;  %v437_v5 = vld [vmem:[#allocation5 + $0x88] sm:$0xff]   ;;  %v439_v7 = vld [vmem:[#allocation5 + $0x50] sm:$0xff]   ;;  %v536_v14 = vmov 1983009808   ;;  %s537_s11 = smov [#allocation7]  }
  0x28   :  { %v435_v3 = vld [vmem:[#allocation5] sm:$0xff]   ;;  %321 = vmatpush1.bf16.msra.mxu1 %v434_v2  ;;  %v438_v6 = vld [vmem:[#allocation5 + $0x8] sm:$0xff]   ;;  %v440_v8 = vld [vmem:[#allocation5 + $0x90] sm:$0xff]   ;;  %v46_v15 = vunpack.c.l.s4 %v536_v14  ;;  %v49_v21 = vshrl.u32 %v48_v16, 7  ;;  %s367_s12 = sshll.u32 %s537_s11, 4  ;;  %s368_s12 = int_to_ptr.vmem [resolvable:$true] %s367_s12 }
  0x29   :  { %405 = vmatpush3.bf16.msra.mxu0 %v435_v3  ;;  %322 = vmatprep.subr.bf16.mxu1 %v535_v0  ;;  %v441_v9 = vld [vmem:[#allocation5 + $0x10] sm:$0xff]   ;;  %v442_v10 = vld [vmem:[#allocation5 + $0x58] sm:$0xff]   ;;  %v445_v13 = vld [vmem:[#allocation5 + $0x60] sm:$0xff]   ;;  %s503_s13 = scalar_lea.vmem %s368_s12, 32  ;;  %p508_p3 = scmp.lt.s32.totalorder %s368_s12, %s368_s12 }
  0x2a   :  { %406 = vmatprep.subr.bf16.mxu0 %v436_v4  ;;  %v443_v11 = vld [vmem:[#allocation5 + $0x98] sm:$0xff]   ;;  %v446_v17 = vld [vmem:[#allocation5 + $0xa0] sm:$0xff]   ;;  %v448_v19 = vld [vmem:[#allocation5 + $0x68] sm:$0xff]   ;;  %v47_v20 = vunpack.c.0.s8 %v46_v15  ;;  %p504_p2 = scmp.ne.s32.totalorder %s368_s12, %s503_s13  ;;  %p509_p4 = scmp.lt.s32.totalorder %s503_s13, %s503_s13 }
  0x2b   :  { %v444_v12 = vld [vmem:[#allocation5 + $0x18] sm:$0xff]   ;;  %v447_v18 = vld [vmem:[#allocation5 + $0x20] sm:$0xff]   ;;  %v449_v22 = vld [vmem:[#allocation5 + $0xa8] sm:$0xff]  }
  0x2c   :  { %323 = vmatpush1.bf16.msra.mxu1 %v437_v5  ;;  %v450_v23 = vld [vmem:[#allocation5 + $0x28] sm:$0xff]   ;;  %v451_v24 = vld [vmem:[#allocation5 + $0x70] sm:$0xff]   ;;  %v50_v25 = vsub.s32 %v47_v20, %v49_v21  ;;  %v42_v28 = vld [vmem:[#allocation2] sm:$0xff]  ;;  %p510_p5 = por %p509_p4, %p508_p3 }
  0x2d   :  { %407 = vmatpush3.bf16.msra.mxu0 %v438_v6  ;;  %324 = vmatprep.subr.bf16.mxu1 %v535_v0  ;;  %v452_v26 = vld [vmem:[#allocation5 + $0xb0] sm:$0xff]   ;;  %v454_v29 = vld [vmem:[#allocation5 + $0x78] sm:$0xff]   ;;  %v44_v30 = vcombine.high %v42_v28, %v42_v28  ;;  %v458_v39 = vld [vmem:[#allocation5 + $0xc0] sm:$0xff]  }
  0x2e   :  { %408 = vmatprep.subr.bf16.mxu0 %v439_v7  ;;  %v453_v27 = vld [vmem:[#allocation5 + $0x30] sm:$0xff]   ;;  %v51_v31 = vrot.slane %v42_v28, %v50_v25  ;;  %v455_v32 = vld [vmem:[#allocation5 + $0xb8] sm:$0xff]   ;;  %p511_p6 = pnand %p510_p5, %p504_p2 }
  0x2f   :  { %v58_v34 = vrot.slane %v44_v30, %v50_v25  ;;  %v456_v35 = vld [vmem:[#allocation5 + $0x38] sm:$0xff]  }
  0x30   :  { %325 = vmatpush1.bf16.msra.mxu1 %v440_v8  ;;  %v59_v33 = vcombine.high %v51_v31, %v51_v31  ;;  %v65_v38 = vpack.c.bf16 %v51_v31, %v51_v31  ;;  %v377_v44 = vld [vmem:[%s615_s2] ss:$0 sm:$0xff] }
  0x31   :  { %409 = vmatpush3.bf16.msra.mxu0 %v441_v9  ;;  %326 = vmatprep.subr.bf16.mxu1 %v535_v0  ;;  %v60_v37 = vcombine.high %v58_v34, %v58_v34  ;;  %v67_v41 = vpack.c.bf16 %v58_v34, %v58_v34 }
  0x32   :  { %410 = vmatprep.subr.bf16.mxu0 %v442_v10  ;;  %v66_v36 = vpack.c.bf16 %v59_v33, %v59_v33 }
  0x33   :  { %v68_v40 = vpack.c.bf16 %v60_v37, %v60_v37 }
  0x34   :  { %327 = vmatpush1.bf16.msra.mxu1 %v443_v11  ;;  %312 = vmatprep.mubr.bf16.mxu0 %v66_v36 }
  0x35   :  { %411 = vmatpush3.bf16.msra.mxu0 %v444_v12  ;;  %328 = vmatprep.subr.bf16.mxu1 %v535_v0 }
  0x36   :  { %412 = vmatprep.subr.bf16.mxu0 %v445_v13  ;;  %403 = vmatprep.mubr.msk.bf16.mxu1 %vm276_vm0, %v68_v40 }
  0x38   :  { %329 = vmatpush1.bf16.msra.mxu1 %v446_v17 }
  0x39   :  { %413 = vmatpush3.bf16.msra.mxu0 %v447_v18  ;;  %330 = vmatprep.subr.bf16.mxu1 %v535_v0 }
  0x3a   :  { %414 = vmatprep.subr.bf16.mxu0 %v448_v19 }
  0x3c   :  { %331 = vmatpush1.bf16.msra.mxu1 %v449_v22 }
  0x3d   :  { %415 = vmatpush3.bf16.msra.mxu0 %v450_v23  ;;  %332 = vmatprep.subr.bf16.mxu1 %v535_v0 }
  0x3e   :  { %416 = vmatprep.subr.bf16.mxu0 %v451_v24 }
  0x40   :  { %333 = vmatpush1.bf16.msra.mxu1 %v452_v26 }
  0x41   :  { %417 = vmatpush3.bf16.msra.mxu0 %v453_v27  ;;  %334 = vmatprep.subr.bf16.mxu1 %v535_v0 }
  0x42   :  { %418 = vmatprep.subr.bf16.mxu0 %v454_v29 }
  0x44   :  { %335 = vmatpush1.bf16.msra.mxu1 %v455_v32 }
  0x45   :  { %419 = vmatpush3.bf16.msra.mxu0 %v456_v35  ;;  %336 = vmatprep.subr.bf16.mxu1 %v535_v0 }
  0x48   :  { %313 = vmatmul.mubr.bf16.vlgmr.msra.gmra.mrb[0].mxu0 %v65_v38  ;;  %337 = vmatpush1.bf16.msra.mxu1 %v458_v39 }
  0x4b   :  { %353 = vmatmul.mubr.bf16.vlgmr.msra.gmra.mrb[0].mxu1 %v67_v41 }
 0x11b   :  { %v420_v42 = vpop.f32.mrb[0].mxu0 }
 0x11c   :  { %v421_v43 = vpop.f32.mrb[1].mxu0 }
 0x11d   :  { %v422_v45 = vadd.f32 %v421_v43, %v420_v42  ;;  %v423_v46 = vpop.f32.mrb[2].mxu0 }
 0x11e   :  { %v424_v47 = vpop.f32.mrb[3].mxu0  ;;  %v354_v48 = vpop.f32.mrb[0].mxu1 }
 0x11f   :  { %v315_v49 = vadd.f32 %v422_v45, %v377_v44  ;;  %v356_v50 = vpop.f32.mrb[1].mxu1 }
 0x120   :  { %v357_v51 = vpop.f32.mrb[2].mxu1 }
 0x121   :  { %v355_v52 = vadd.f32 %v354_v48, %v315_v49  ;;  %v358_v53 = vpop.f32.mrb[3].mxu1 }
 0x123   :  { %360 = vst [vmem:[#allocation7] sm:$0x3] %v355_v52 }
 0x124   :  { %514 = shalt.err (!%p511_p6)
}
 0x125   :  { %s515_s15 = scalar_lea.hbm %s616_s3, 32 }
 0x126   :  { %p516_p7 = scmp.ne.s32.totalorder %s616_s3, %s515_s15  ;;  %p519_p8 = scmp.lt.u32.totalorder %s515_s15, %s616_s3 }
 0x128   :  { %p521_p9 = pnand %p519_p8, %p516_p7 }
 0x12a   :  { %524 = shalt.err (!%p521_p9)
}
 0x12b   :  { %370 = dma.vmem_to_hbm [thread:$0]  %s368_s12, 32, %s616_s3, [#allocation4]  }
 0x12c   :  { %529 = dma.done.wait [#allocation4], 32  }
 0x12d   :  { %530 = vsyncadd [#allocation4], 4294967264 }
 0x12e   :  { %374 = vsyncpa [#allocation3], 1 }
 0x12f   :  { %375 = vsyncpa [#allocation6], 1 }
 0x130   :  { %376 = vsyncpa [#allocation4], 1 }

</bundles_post_ra>
